<compile_context>
chip_gen: v6e
topology: v6e:2x2x1
jax: 0.10.0
libtpu: 0.0.40
codegen_flags: <defaults>
</compile_context>

<pallas_src>
import jax
import jax.numpy as jnp
from jax.experimental import pallas as pl
from jax.experimental.pallas import tpu as pltpu


def _node_feat_emb_kernel(x_ref, w1_ref, b1_ref, w2_ref, b2_ref, o_ref):
    # x_ref:  (tm, P*D)   lane-packed row tile of activations (x dtype)
    # w1_ref: (P*D, P*H)  block-diagonal Linear1 weight (in x out), f32
    # b1_ref: (1, P*H)
    # w2_ref: (P*H, P*E)  block-diagonal Linear2 weight (in x out), H == D
    # b2_ref: (1, P*E)
    # o_ref:  (tm, P*E)   (x dtype)
    x = x_ref[...].astype(jnp.float32)          # free upcast under the DMA
    h = jnp.dot(x, w1_ref[...], preferred_element_type=jnp.float32) + b1_ref[...]
    h = jnp.maximum(h, 0.0)                     # ReLU 1 (VPU)
    z = jnp.dot(h, w2_ref[...], preferred_element_type=jnp.float32) + b2_ref[...]
    o_ref[...] = jnp.maximum(z, 0.0).astype(o_ref.dtype)   # ReLU 2


def _round_up(x, m):
    return ((x + m - 1) // m) * m


def _cdiv(a, b):
    return (a + b - 1) // b


def _choose_tile(mp, tm_max):
    """Pick (tile_rows, grid_steps) for mp packed rows."""
    if mp < 16:
        # Not enough rows to split; one block whose sublane dim equals the
        # full array dim (always a legal block shape).
        return max(mp, 1), 1
    steps = max(2, _cdiv(mp, tm_max))
    if steps % 2:
        steps += 1            # even step count -> balanced v7x 2-TC split
    tm = _round_up(_cdiv(mp, steps), 8)
    return tm, _cdiv(mp, tm)


def node_feature_embedding_pack(w1, b1, w2, b2):
    """Pack weights once (parameter-load time), hoisted out of the call path."""
    H, D = w1.shape
    E = w2.shape[0]
    assert w1.shape == (H, D) and w2.shape == (E, D)
    assert H == D, "module wiring requires pos_feat_hidden == pos_feat_dim"

    P = 128 // D if (D <= 128 and 128 % D == 0) else 1
    eye = jnp.eye(P, dtype=jnp.float32)
    w1p = jnp.kron(eye, w1.T.astype(jnp.float32))                 # (P*D, P*H)
    w2p = jnp.kron(eye, w2.T.astype(jnp.float32))                 # (P*H, P*E)
    b1p = jnp.tile(b1.reshape(1, H).astype(jnp.float32), (1, P))  # (1, P*H)
    b2p = jnp.tile(b2.reshape(1, E).astype(jnp.float32), (1, P))  # (1, P*E)
    return dict(w1p=w1p, b1p=b1p, w2p=w2p, b2p=b2p, D=D, H=H, E=E, P=P)


def node_feature_embedding_apply(x, packed, *, tm=8192):
    """x: (B, N, pos_feat_dim).  Returns (B, N, emb_dim) in x's dtype."""
    B, N, D = x.shape
    assert D == packed["D"], "feature dim mismatch vs packed params"
    P, H, E = packed["P"], packed["H"], packed["E"]
    Dp, Hp, Ep = P * D, P * H, P * E

    M = B * N
    m_pad = _round_up(M, P)       # pad at most P-1 rows (lane packing only)
    mp = m_pad // P

    x2 = x.reshape(M, D)
    if m_pad > M:
        x2 = jnp.pad(x2, ((0, m_pad - M), (0, 0)))
    xp = x2.reshape(mp, Dp)       # free row-major view

    tm_eff, steps = _choose_tile(mp, tm)

    act_bytes = jnp.dtype(x.dtype).itemsize
    w_bytes = 4 * (Dp * Hp + Hp * Ep + Hp + Ep)
    # double-buffered x tile + out tile + (tiny, constant-index) weights
    vmem_limit = 2 * tm_eff * (Dp + Ep) * act_bytes + 2 * w_bytes + (16 << 20)

    cost = pl.CostEstimate(
        flops=2 * steps * tm_eff * (Dp * Hp + Hp * Ep),   # real block-diag work
        transcendentals=0,
        bytes_accessed=steps * tm_eff * (Dp + Ep) * act_bytes + w_bytes,
    )

    out = pl.pallas_call(
        _node_feat_emb_kernel,
        out_shape=jax.ShapeDtypeStruct((mp, Ep), x.dtype),
        grid_spec=pltpu.PrefetchScalarGridSpec(
            num_scalar_prefetch=0,
            grid=(steps,),
            in_specs=[
                pl.BlockSpec((tm_eff, Dp), lambda i: (i, 0)),   # packed x tile
                pl.BlockSpec((Dp, Hp), lambda i: (0, 0)),       # W1 (resident)
                pl.BlockSpec((1, Hp), lambda i: (0, 0)),        # b1
                pl.BlockSpec((Hp, Ep), lambda i: (0, 0)),       # W2 (resident)
                pl.BlockSpec((1, Ep), lambda i: (0, 0)),        # b2
            ],
            out_specs=pl.BlockSpec((tm_eff, Ep), lambda i: (i, 0)),
        ),
        compiler_params=pltpu.CompilerParams(
            dimension_semantics=("parallel",),
            vmem_limit_bytes=int(vmem_limit),
        ),
        cost_estimate=cost,
    )(xp, packed["w1p"], packed["b1p"], packed["w2p"], packed["b2p"])

    # (mp, P*E) is a free row-major view of (mp*P, E).
    out = out.reshape(mp * P, E)
    if m_pad > M:
        out = out[:M]             # drops at most P-1 rows (near-no-op)
    return out.reshape(B, N, E)


def node_feature_embedding(x, w1, b1, w2, b2, *, tm=8192):
    """Convenience wrapper: pack + apply (prefer packing once at load time)."""
    return node_feature_embedding_apply(
        x, node_feature_embedding_pack(w1, b1, w2, b2), tm=tm)


def _init_linear(key, out_features, in_features):
    # deterministic nn.Linear-style init: U(-1/sqrt(in), 1/sqrt(in))
    kw, kb = jax.random.split(key)
    bound = 1.0 / jnp.sqrt(jnp.float32(in_features))
    w = jax.random.uniform(kw, (out_features, in_features),
                           minval=-bound, maxval=bound, dtype=jnp.float32)
    b = jax.random.uniform(kb, (out_features,),
                           minval=-bound, maxval=bound, dtype=jnp.float32)
    return w, b


def _reference(x, w1, b1, w2, b2):
    h = jnp.maximum(jnp.einsum("bnd,hd->bnh", x, w1) + b1, 0.0)
    z = jnp.maximum(jnp.einsum("bnh,eh->bne", h, w2) + b2, 0.0)
    return z


if __name__ == "__main__":
    pos_feat_dim = 32
    pos_feat_hidden = 32     # must equal pos_feat_dim (see module wiring note)
    emb_dim = 64

    key = jax.random.PRNGKey(0)
    kx, k1, k2, kx2 = jax.random.split(key, 4)

    w1, b1 = _init_linear(k1, pos_feat_hidden, pos_feat_dim)
    w2, b2 = _init_linear(k2, emb_dim, pos_feat_dim)
    packed = node_feature_embedding_pack(w1, b1, w2, b2)   # packed once

    # Case 1: small, P-aligned row count (single ragged-free block).
    B, N = 2, 8
    x = jax.random.normal(kx, (B, N, pos_feat_dim), dtype=jnp.float32)
    out = jax.block_until_ready(node_feature_embedding_apply(x, packed))
    ref = _reference(x, w1, b1, w2, b2)
    assert out.shape == (B, N, emb_dim)
    assert jnp.allclose(out, ref, atol=1e-5, rtol=1e-5), "mismatch vs reference (case 1)"

    # Case 2: non-P-aligned row count + multi-step grid with a ragged last
    # block (exercises the no-tile-padding path).
    B2, N2 = 3, 37
    x2 = jax.random.normal(kx2, (B2, N2, pos_feat_dim), dtype=jnp.float32)
    out2 = jax.block_until_ready(node_feature_embedding_apply(x2, packed))
    ref2 = _reference(x2, w1, b1, w2, b2)
    assert out2.shape == (B2, N2, emb_dim)
    assert jnp.allclose(out2, ref2, atol=1e-5, rtol=1e-5), "mismatch vs reference (case 2)"

    print("KERNEL_OK")
</pallas_src>

<mosaic_0001>
module attributes {stable_mosaic.version = 11 : i64} {
  func.func @_node_feat_emb_kernel(%arg0: i32, %arg1: memref<4x128xf32, #tpu.memory_space<vmem>>, %arg2: memref<128x128xf32, #tpu.memory_space<vmem>>, %arg3: memref<1x128xf32, #tpu.memory_space<vmem>>, %arg4: memref<128x256xf32, #tpu.memory_space<vmem>>, %arg5: memref<1x256xf32, #tpu.memory_space<vmem>>, %arg6: memref<4x256xf32, #tpu.memory_space<vmem>>) attributes {dimension_semantics = [#tpu.dimension_semantics<parallel>], iteration_bounds = array<i64: 1>, scalar_prefetch = 0 : i64, scratch_operands = 0 : i64, tpu.core_type = #tpu.core_type<tc>, window_params = [{transform_indices = @transform_0, window_bounds = array<i64: 4, 128>}, {pipeline_mode = #tpu.pipeline_mode<synchronous>, transform_indices = @transform_1, window_bounds = array<i64: 128, 128>}, {pipeline_mode = #tpu.pipeline_mode<synchronous>, transform_indices = @transform_2, window_bounds = array<i64: 1, 128>}, {pipeline_mode = #tpu.pipeline_mode<synchronous>, transform_indices = @transform_3, window_bounds = array<i64: 128, 256>}, {pipeline_mode = #tpu.pipeline_mode<synchronous>, transform_indices = @transform_4, window_bounds = array<i64: 1, 256>}, {transform_indices = @transform_5, window_bounds = array<i64: 4, 256>}]} {
    %c0 = arith.constant 0 : index
    %c0_0 = arith.constant 0 : index
    %0 = vector.load %arg1[%c0, %c0_0] : memref<4x128xf32, #tpu.memory_space<vmem>>, vector<4x128xf32>
    %c0_1 = arith.constant 0 : index
    %c0_2 = arith.constant 0 : index
    %1 = vector.load %arg2[%c0_1, %c0_2] : memref<128x128xf32, #tpu.memory_space<vmem>>, vector<128x128xf32>
    %cst = arith.constant dense<0.000000e+00> : vector<4x128xf32>
    %2 = tpu.matmul %0, %1, %cst {dimension_numbers = #tpu.dot_dimension_numbers<[1], [0], [0], [1], [0, 0, 1, 1], [], []>} : vector<4x128xf32>, vector<128x128xf32>, vector<4x128xf32> -> vector<4x128xf32>
    %c0_3 = arith.constant 0 : index
    %c0_4 = arith.constant 0 : index
    %3 = vector.load %arg3[%c0_3, %c0_4] : memref<1x128xf32, #tpu.memory_space<vmem>>, vector<1x128xf32>
    %4 = vector.broadcast %3 : vector<1x128xf32> to vector<4x128xf32>
    %5 = arith.addf %2, %4 : vector<4x128xf32>
    %cst_5 = arith.constant 0.000000e+00 : f32
    %6 = vector.broadcast %cst_5 : f32 to vector<4x128xf32>
    %7 = arith.maximumf %5, %6 : vector<4x128xf32>
    %c0_6 = arith.constant 0 : index
    %c0_7 = arith.constant 0 : index
    %8 = vector.load %arg4[%c0_6, %c0_7] : memref<128x256xf32, #tpu.memory_space<vmem>>, vector<128x256xf32>
    %cst_8 = arith.constant dense<0.000000e+00> : vector<4x256xf32>
    %9 = tpu.matmul %7, %8, %cst_8 {dimension_numbers = #tpu.dot_dimension_numbers<[1], [0], [0], [1], [0, 0, 1, 1], [], []>} : vector<4x128xf32>, vector<128x256xf32>, vector<4x256xf32> -> vector<4x256xf32>
    %c0_9 = arith.constant 0 : index
    %c0_10 = arith.constant 0 : index
    %10 = vector.load %arg5[%c0_9, %c0_10] : memref<1x256xf32, #tpu.memory_space<vmem>>, vector<1x256xf32>
    %11 = vector.broadcast %10 : vector<1x256xf32> to vector<4x256xf32>
    %12 = arith.addf %9, %11 : vector<4x256xf32>
    %cst_11 = arith.constant 0.000000e+00 : f32
    %13 = vector.broadcast %cst_11 : f32 to vector<4x256xf32>
    %14 = arith.maximumf %12, %13 : vector<4x256xf32>
    %c0_12 = arith.constant 0 : index
    %c0_13 = arith.constant 0 : index
    %15 = vector.load %arg6[%c0_12, %c0_13] : memref<4x256xf32, #tpu.memory_space<vmem>>, vector<4x256xf32>
    tpu.vector_store %arg6[%c0_12, %c0_13], %14 {strides = array<i32>} : memref<4x256xf32, #tpu.memory_space<vmem>>, vector<4x256xf32>,
    return
  }
  func.func @transform_0(%arg0: i32) -> (i32, i32) {
    %c0_i32 = arith.constant 0 : i32
    %c0_i32_0 = arith.constant 0 : i32
    return %arg0, %c0_i32 : i32, i32
  }
  func.func @transform_1(%arg0: i32) -> (i32, i32) {
    %c0_i32 = arith.constant 0 : i32
    %c0_i32_0 = arith.constant 0 : i32
    %c0_i32_1 = arith.constant 0 : i32
    return %c0_i32, %c0_i32_0 : i32, i32
  }
  func.func @transform_2(%arg0: i32) -> (i32, i32) {
    %c0_i32 = arith.constant 0 : i32
    %c0_i32_0 = arith.constant 0 : i32
    %c0_i32_1 = arith.constant 0 : i32
    return %c0_i32, %c0_i32_0 : i32, i32
  }
  func.func @transform_3(%arg0: i32) -> (i32, i32) {
    %c0_i32 = arith.constant 0 : i32
    %c0_i32_0 = arith.constant 0 : i32
    %c0_i32_1 = arith.constant 0 : i32
    return %c0_i32, %c0_i32_0 : i32, i32
  }
  func.func @transform_4(%arg0: i32) -> (i32, i32) {
    %c0_i32 = arith.constant 0 : i32
    %c0_i32_0 = arith.constant 0 : i32
    %c0_i32_1 = arith.constant 0 : i32
    return %c0_i32, %c0_i32_0 : i32, i32
  }
  func.func @transform_5(%arg0: i32) -> (i32, i32) {
    %c0_i32 = arith.constant 0 : i32
    %c0_i32_0 = arith.constant 0 : i32
    return %arg0, %c0_i32 : i32, i32
  }
}

</mosaic_0001>

<bundles_post_ra>
// kernel: tpu_custom_call.1
= control target key start
LH: loop header
LB: loop body
LE: loop exit
PB: predicated region body
PF: predicated region fallthrough
CT: control target
= control target key end

     0   :  { %10 = vsyncpa [#allocation3], 0  ;;  %s518_s0 = inlined_call_operand.hbm [shape: f32[4,128], index: 0, kind: input, shape index: {}]   ;;  %s519_s1 = inlined_call_operand.hbm [shape: f32[128,128], index: 1, kind: input, shape index: {}]   ;;  %s520_s2 = inlined_call_operand.vmem [shape: f32[1,128], index: 2, kind: input, shape index: {}]   ;;  %s521_s3 = inlined_call_operand.hbm [shape: f32[128,256], index: 3, kind: input, shape index: {}]   ;;  %s522_s4 = inlined_call_operand.vmem [shape: f32[1,256], index: 4, kind: input, shape index: {}]   ;;  %s523_s5 = inlined_call_operand.hbm [shape: f32[4,256], index: 5, kind: output, shape index: {}]  }
   0x1   :  { %11 = vsyncpa [#allocation6], 0 }
   0x2   :  { %12 = vsyncpa [#allocation4], 0  ;;  %s442_s18 = smov [#allocation5]  }
   0x3   :  { %s28_s19 = sshll.u32 %s442_s18, 4  ;;  %s29_s19 = int_to_ptr.vmem [resolvable:$true] %s28_s19 }
   0x4   :  { %s364_s20 = scalar_lea.vmem %s29_s19, 2048  ;;  %p369_p1 = scmp.lt.s32.totalorder %s29_s19, %s29_s19 }
   0x5   :  { %p365_p0 = scmp.ne.s32.totalorder %s29_s19, %s364_s20  ;;  %p370_p2 = scmp.lt.s32.totalorder %s364_s20, %s364_s20 }
   0x7   :  { %p371_p3 = por %p370_p2, %p369_p1 }
   0x9   :  { %p372_p4 = pnand %p371_p3, %p365_p0 }
   0xb   :  { %375 = shalt.err (!%p372_p4)
}
   0xc   :  { %s443_s21 = smov 128   ;;  %s444_s22 = smov 8  }
   0xd   :  { %34 = dma.hbm_to_vmem [thread:$0]  %s519_s1, 2048, %s29_s19, [#allocation6], %s443_s21, %s443_s21, %s444_s22  }
   0xe   :  { %s445_s25 = smov [#allocation2]   ;;  %s446_s27 = smov [#allocation7]  }
   0xf   :  { %s19_s26 = sshll.u32 %s445_s25, 4  ;;  %s42_s28 = sshll.u32 %s446_s27, 4  ;;  %s20_s26 = int_to_ptr.vmem [resolvable:$true] %s19_s26  ;;  %s43_s28 = int_to_ptr.vmem [resolvable:$true] %s42_s28 }
  0x10   :  { %s384_s29 = scalar_lea.vmem %s20_s26, 64  ;;  %p389_p6 = scmp.lt.s32.totalorder %s20_s26, %s20_s26 }
  0x11   :  { %p385_p5 = scmp.ne.s32.totalorder %s20_s26, %s384_s29  ;;  %p390_p7 = scmp.lt.s32.totalorder %s384_s29, %s384_s29 }
  0x13   :  { %p391_p8 = por %p390_p7, %p389_p6 }
  0x15   :  { %p392_p9 = pnand %p391_p8, %p385_p5 }
  0x17   :  { %395 = shalt.err (!%p392_p9)
}
  0x18   :  { %22 = dma.hbm_to_vmem [thread:$0]  %s518_s0, 64, %s20_s26, [#allocation3]  }
  0x19   :  { %s404_s7 = scalar_lea.vmem %s43_s28, 4096  ;;  %p409_p11 = scmp.lt.s32.totalorder %s43_s28, %s43_s28 }
  0x1a   :  { %p405_p10 = scmp.ne.s32.totalorder %s43_s28, %s404_s7  ;;  %p410_p12 = scmp.lt.s32.totalorder %s404_s7, %s404_s7 }
  0x1c   :  { %p411_p13 = por %p410_p12, %p409_p11 }
  0x1e   :  { %p412_p0 = pnand %p411_p13, %p405_p10 }
  0x20   :  { %415 = shalt.err (!%p412_p0)
}
  0x21   :  { %s447_s1 = smov 256   ;;  %s448_s8 = smov 16  }
  0x22   :  { %48 = dma.hbm_to_vmem [thread:$0]  %s521_s3, 4096, %s43_s28, [#allocation6], %s447_s1, %s447_s1, %s448_s8  }
  0x23   :  { %436 = dma.done.wait [#allocation3], 64  }
  0x24   :  { %437 = vsyncadd [#allocation3], 4294967232 }
  0x25   :  { %438 = dma.done.wait [#allocation6], 6144  }
  0x26   :  { %439 = vsyncadd [#allocation6], 4294961152  ;;  %v449_v0 = vmov 0.0   ;;  %vm450_vm0 = vmmov 0   ;;  %v76_v1 = vld [vmem:[#allocation5 + $0x78] sm:$0xff]  ;;  %v75_v2 = vld [vmem:[#allocation5 + $0x70] sm:$0xff]  ;;  %v189_v55 = vlaneseq }
  0x27   :  { %311 = vmatprep.subr.mxu0 %v449_v0  ;;  %343 = vmatprep.mubr.msk.f32.mxu0 %vm450_vm0, %v449_v0  ;;  %v74_v3 = vld [vmem:[#allocation5 + $0x68] sm:$0xff]  ;;  %v73_v4 = vld [vmem:[#allocation5 + $0x60] sm:$0xff]  ;;  %v72_v5 = vld [vmem:[#allocation5 + $0x58] sm:$0xff] }
  0x28   :  { %263 = vmatprep.mubr.f32.mxu1 %v449_v0  ;;  %312 = vmatpush3.msra.mxu0 %v76_v1  ;;  %v186_v6 = vld [vmem:[#allocation7 + $0xf8] sm:$0xff]  ;;  %v185_v7 = vld [vmem:[#allocation7 + $0xf0] sm:$0xff]  ;;  %v184_v8 = vld [vmem:[#allocation7 + $0xe8] sm:$0xff]  ;;  %v190_v56 = vshrl.u32 %v189_v55, 7 }
  0x29   :  { %313 = vmatprep.subr.mxu0 %v449_v0  ;;  %199 = vmatprep.subr.mxu1 %v186_v6  ;;  %v183_v9 = vld [vmem:[#allocation7 + $0xe0] sm:$0xff]  ;;  %v182_v10 = vld [vmem:[#allocation7 + $0xd8] sm:$0xff]  ;;  %v71_v11 = vld [vmem:[#allocation5 + $0x50] sm:$0xff] }
  0x2a   :  { %314 = vmatpush3.msra.mxu0 %v75_v2  ;;  %200 = vmatpush1.msra.mxu1 %v185_v7  ;;  %v181_v12 = vld [vmem:[#allocation7 + $0xd0] sm:$0xff]  ;;  %v180_v13 = vld [vmem:[#allocation7 + $0xc8] sm:$0xff]  ;;  %v179_v15 = vld [vmem:[#allocation7 + $0xc0] sm:$0xff]  ;;  %v191_v57 = vsub.s32 0, %v190_v56  ;;  %v195_v59 = vsub.s32 1, %v190_v56 }
  0x2b   :  { %315 = vmatprep.subr.mxu0 %v449_v0  ;;  %201 = vmatprep.subr.mxu1 %v184_v8  ;;  %v70_v14 = vld [vmem:[#allocation5 + $0x48] sm:$0xff]  ;;  %v178_v16 = vld [vmem:[#allocation7 + $0xb8] sm:$0xff]  ;;  %v69_v17 = vld [vmem:[#allocation5 + $0x40] sm:$0xff] }
  0x2c   :  { %316 = vmatpush3.msra.mxu0 %v74_v3  ;;  %202 = vmatpush1.msra.mxu1 %v183_v9  ;;  %v177_v18 = vld [vmem:[#allocation7 + $0xb0] sm:$0xff]  ;;  %v176_v19 = vld [vmem:[#allocation7 + $0xa8] sm:$0xff]  ;;  %v68_v20 = vld [vmem:[#allocation5 + $0x38] sm:$0xff] }
  0x2d   :  { %317 = vmatprep.subr.mxu0 %v449_v0  ;;  %203 = vmatprep.subr.mxu1 %v182_v10  ;;  %v175_v21 = vld [vmem:[#allocation7 + $0xa0] sm:$0xff]  ;;  %v174_v22 = vld [vmem:[#allocation7 + $0x98] sm:$0xff]  ;;  %v67_v23 = vld [vmem:[#allocation5 + $0x30] sm:$0xff] }
  0x2e   :  { %318 = vmatpush3.msra.mxu0 %v73_v4  ;;  %204 = vmatpush1.msra.mxu1 %v181_v12  ;;  %v173_v24 = vld [vmem:[#allocation7 + $0x90] sm:$0xff]  ;;  %v172_v25 = vld [vmem:[#allocation7 + $0x88] sm:$0xff]  ;;  %v171_v27 = vld [vmem:[#allocation7 + $0x80] sm:$0xff] }
  0x2f   :  { %319 = vmatprep.subr.mxu0 %v449_v0  ;;  %205 = vmatprep.subr.mxu1 %v180_v13  ;;  %v66_v26 = vld [vmem:[#allocation5 + $0x28] sm:$0xff]  ;;  %v170_v28 = vld [vmem:[#allocation7 + $0x78] sm:$0xff]  ;;  %v65_v29 = vld [vmem:[#allocation5 + $0x20] sm:$0xff] }
  0x30   :  { %320 = vmatpush3.msra.mxu0 %v72_v5  ;;  %206 = vmatpush1.msra.mxu1 %v179_v15  ;;  %v169_v30 = vld [vmem:[#allocation7 + $0x70] sm:$0xff]  ;;  %v168_v31 = vld [vmem:[#allocation7 + $0x68] sm:$0xff]  ;;  %v64_v32 = vld [vmem:[#allocation5 + $0x18] sm:$0xff] }
  0x31   :  { %321 = vmatprep.subr.mxu0 %v449_v0  ;;  %207 = vmatprep.subr.mxu1 %v178_v16  ;;  %v167_v33 = vld [vmem:[#allocation7 + $0x60] sm:$0xff]  ;;  %v166_v34 = vld [vmem:[#allocation7 + $0x58] sm:$0xff]  ;;  %v63_v35 = vld [vmem:[#allocation5 + $0x10] sm:$0xff] }
  0x32   :  { %322 = vmatpush3.msra.mxu0 %v71_v11  ;;  %208 = vmatpush1.msra.mxu1 %v177_v18  ;;  %v165_v36 = vld [vmem:[#allocation7 + $0x50] sm:$0xff]  ;;  %v164_v37 = vld [vmem:[#allocation7 + $0x48] sm:$0xff]  ;;  %v163_v39 = vld [vmem:[#allocation7 + $0x40] sm:$0xff] }
  0x33   :  { %323 = vmatprep.subr.mxu0 %v449_v0  ;;  %209 = vmatprep.subr.mxu1 %v176_v19  ;;  %v62_v38 = vld [vmem:[#allocation5 + $0x8] sm:$0xff]  ;;  %v162_v40 = vld [vmem:[#allocation7 + $0x38] sm:$0xff]  ;;  %v61_v41 = vld [vmem:[#allocation5] sm:$0xff] }
  0x34   :  { %324 = vmatpush3.msra.mxu0 %v70_v14  ;;  %210 = vmatpush1.msra.mxu1 %v175_v21  ;;  %v161_v42 = vld [vmem:[#allocation7 + $0x30] sm:$0xff]  ;;  %v60_v43 = vld [vmem:[#allocation2] sm:$0xf]  ;;  %v160_v44 = vld [vmem:[#allocation7 + $0x28] sm:$0xff] }
  0x35   :  { %325 = vmatprep.subr.mxu0 %v449_v0  ;;  %211 = vmatprep.subr.mxu1 %v174_v22  ;;  %v159_v45 = vld [vmem:[#allocation7 + $0x20] sm:$0xff]  ;;  %v158_v46 = vld [vmem:[#allocation7 + $0x18] sm:$0xff]  ;;  %v157_v47 = vld [vmem:[#allocation7 + $0x10] sm:$0xff] }
  0x36   :  { %326 = vmatpush3.msra.mxu0 %v69_v17  ;;  %212 = vmatpush1.msra.mxu1 %v173_v24  ;;  %v156_v48 = vld [vmem:[#allocation7 + $0x8] sm:$0xff]  ;;  %v155_v49 = vld [vmem:[#allocation7] sm:$0xff]  ;;  %v293_v50 = vld [vmem:[%s520_s2] ss:$0 sm:$0xff]  ;;  %s451_s2 = smov [#allocation8]  }
  0x37   :  { %327 = vmatprep.subr.mxu0 %v449_v0  ;;  %213 = vmatprep.subr.mxu1 %v172_v25  ;;  %v187_v58 = vld [vmem:[%s522_s4] sm:$0x3]  ;;  %s283_s13 = sshll.u32 %s451_s2, 4  ;;  %s284_s13 = int_to_ptr.vmem [resolvable:$true] %s283_s13 }
  0x38   :  { %328 = vmatpush3.msra.mxu0 %v68_v20  ;;  %214 = vmatpush1.msra.mxu1 %v171_v27  ;;  %v192_v60 = vrot.slane %v187_v58, %v191_v57  ;;  %v196_v61 = vrot.slane %v187_v58, %v195_v59  ;;  %s416_s14 = scalar_lea.vmem %s284_s13, 128  ;;  %p421_p2 = scmp.lt.s32.totalorder %s284_s13, %s284_s13 }
  0x39   :  { %329 = vmatprep.subr.mxu0 %v449_v0  ;;  %215 = vmatprep.subr.mxu1 %v170_v28  ;;  %p417_p1 = scmp.ne.s32.totalorder %s284_s13, %s416_s14  ;;  %p422_p3 = scmp.lt.s32.totalorder %s416_s14, %s416_s14 }
  0x3a   :  { %330 = vmatpush3.msra.mxu0 %v67_v23  ;;  %216 = vmatpush1.msra.mxu1 %v169_v30 }
  0x3b   :  { %331 = vmatprep.subr.mxu0 %v449_v0  ;;  %217 = vmatprep.subr.mxu1 %v168_v31  ;;  %p423_p4 = por %p422_p3, %p421_p2 }
  0x3c   :  { %332 = vmatpush3.msra.mxu0 %v66_v26  ;;  %218 = vmatpush1.msra.mxu1 %v167_v33 }
  0x3d   :  { %333 = vmatprep.subr.mxu0 %v449_v0  ;;  %219 = vmatprep.subr.mxu1 %v166_v34  ;;  %p424_p5 = pnand %p423_p4, %p417_p1 }
  0x3e   :  { %334 = vmatpush3.msra.mxu0 %v65_v29  ;;  %220 = vmatpush1.msra.mxu1 %v165_v36 }
  0x3f   :  { %335 = vmatprep.subr.mxu0 %v449_v0  ;;  %221 = vmatprep.subr.mxu1 %v164_v37 }
  0x40   :  { %336 = vmatpush3.msra.mxu0 %v64_v32  ;;  %222 = vmatpush1.msra.mxu1 %v163_v39 }
  0x41   :  { %337 = vmatprep.subr.mxu0 %v449_v0  ;;  %223 = vmatprep.subr.mxu1 %v162_v40 }
  0x42   :  { %338 = vmatpush3.msra.mxu0 %v63_v35  ;;  %224 = vmatpush1.msra.mxu1 %v161_v42 }
  0x43   :  { %339 = vmatprep.subr.mxu0 %v449_v0  ;;  %225 = vmatprep.subr.mxu1 %v160_v44 }
  0x44   :  { %340 = vmatpush3.msra.mxu0 %v62_v38  ;;  %226 = vmatpush1.msra.mxu1 %v159_v45 }
  0x45   :  { %341 = vmatprep.subr.mxu0 %v449_v0  ;;  %227 = vmatprep.subr.mxu1 %v158_v46 }
  0x46   :  { %342 = vmatpush3.msra.mxu0 %v61_v41  ;;  %228 = vmatpush1.msra.mxu1 %v157_v47 }
  0x47   :  { %344 = vmatmul.mubr.f32.vlgmr.msra.gmra.mxu0 %v60_v43  ;;  %229 = vmatprep.subr.mxu1 %v156_v48 }
  0x48   :  { %230 = vmatpush1.msra.mxu1 %v155_v49 }
 0x107   :  { %v150_v51 = vpop.f32.mrf.mxu0 }
 0x108   :  { %v151_v52 = vadd.f32 %v293_v50, %v150_v51 }
 0x109   :  { %v345_v53 = vpop.f32.mrf.mxu0 }
 0x10a   :  { %v154_v54 = vmax.f32 %v151_v52, 0.0 }
 0x10c   :  { %264 = vmatmul.mubr.f32.vlgmr.msra.gmra.mxu1 %v154_v54 }
 0x1cc   :  { %v265_v62 = vpop.f32.mrf.mxu1 }
 0x1cd   :  { %v266_v63 = vadd.f32 %v265_v62, %v192_v60 }
 0x1ce   :  { %v267_v0 = vpop.f32.mrf.mxu1 }
 0x1cf   :  { %v268_v1 = vadd.f32 %v267_v0, %v196_v61  ;;  %v270_v2 = vmax.f32 %v266_v63, 0.0 }
 0x1d1   :  { %v271_v3 = vmax.f32 %v268_v1, 0.0 }
 0x1d3   :  { %v274_v4 = vcombine.low %v270_v2, %v271_v3 }
 0x1d5   :  { %276 = vst [vmem:[#allocation8] sm:$0xff] %v274_v4 }
 0x1d6   :  { %427 = shalt.err (!%p424_p5)
}
 0x1d7   :  { %286 = dma.vmem_to_hbm [thread:$0]  %s284_s13, 128, %s523_s5, [#allocation4]  }
 0x1d8   :  { %440 = dma.done.wait [#allocation4], 128  }
 0x1d9   :  { %441 = vsyncadd [#allocation4], 4294967168 }
 0x1da   :  { %290 = vsyncpa [#allocation3], 1 }
 0x1db   :  { %291 = vsyncpa [#allocation6], 1 }
 0x1dc   :  { %292 = vsyncpa [#allocation4], 1 }

</bundles_post_ra>
